<compile_context>
chip_gen: v7x
topology: tpu7x:2x2x1
jax: 0.10.0
libtpu: 0.0.40
codegen_flags: <defaults>
</compile_context>

<pallas_src>
import functools

import jax
import jax.numpy as jnp
from jax import lax
from jax.experimental import pallas as pl
from jax.experimental.pallas import tpu as pltpu

EPS = 1e-5           # PyTorch default eps for BatchNorm1d and LayerNorm
_LANE = 128          # vreg lane width
_SUBLANE = 8         # vreg sublane width
# ~2 MiB (f32-equivalent) of input per block.
_TARGET_BLOCK_ELEMS = (2 * 1024 * 1024) // 4


@functools.lru_cache(maxsize=None)
def _chip_config():
    """(vmem_limit_bytes, fit_budget_bytes, multi_core) for the local chip."""
    try:
        cap = int(pltpu.get_tpu_info().vmem_capacity_bytes)
        if cap <= 0:
            raise ValueError("bad vmem capacity")
    except Exception:
        cap = 64 << 20                       # conservative default (v7x per-TC VMEM)
    # Raise the scoped-VMEM limit (default 16/32 MiB) but stay clear of the
    # physical capacity: 64 MiB on 128 MiB chips (v5e/v6e), ~45 MiB on v7x.
    vmem_limit = max(32 << 20, min(int(cap * 0.7), 64 << 20))
    fit_budget = vmem_limit - (4 << 20)      # headroom for compiler scratch
    multi_core = cap <= (80 << 20)           # v7x-like: 2 TensorCores per chip
    return vmem_limit, fit_budget, multi_core


def _compiler_params(sem, vmem_limit):
    return pltpu.CompilerParams(dimension_semantics=sem,
                                vmem_limit_bytes=vmem_limit)


def _round_down(v, align):
    return max(align, (v // align) * align)


def _working_bytes(elems, in_item, out_item):
    # Double-buffered in/out blocks (source dtype) + ~4 f32-sized temporaries.
    return elems * (2 * in_item + 2 * out_item + 16)


def _split_for_two_cores(dim, tile, align, multi_core):
    """If the grid would have a single step on a 2-TC chip, halve the tile so
    both TensorCores (and their DMA engines) get work."""
    if multi_core and pl.cdiv(dim, tile) == 1 and dim >= 2 * align:
        tile = pl.cdiv(pl.cdiv(dim, 2), align) * align
    return tile


def _bn_tile_n(B, N, itemsize, fit_budget, multi_core):
    """Feature-axis tile for the single-pass BatchNorm kernel (block = (B, tile))."""
    if N <= _LANE:
        return N                       # full dim lifts the 128-alignment rule
    if (B * N <= _TARGET_BLOCK_ELEMS and
            _working_bytes(B * N, itemsize, itemsize) <= fit_budget):
        tile = N
    else:
        tile = _round_down(min(N, max(_TARGET_BLOCK_ELEMS // B, _LANE)), _LANE)
        while tile > _LANE and _working_bytes(B * tile, itemsize, itemsize) > fit_budget:
            tile = _round_down(tile // 2, _LANE)
    return _split_for_two_cores(N, tile, _LANE, multi_core)


def _ln_tile_b(B, N, itemsize, fit_budget, multi_core):
    """Batch-axis tile for the LayerNorm kernel (block = (tile, N))."""
    if B <= _SUBLANE:
        return B
    if (B * N <= _TARGET_BLOCK_ELEMS and
            _working_bytes(B * N, itemsize, itemsize) <= fit_budget):
        tile = B
    else:
        tile = _round_down(min(B, max(_TARGET_BLOCK_ELEMS // N, _SUBLANE)), _SUBLANE)
        while tile > _SUBLANE and _working_bytes(tile * N, itemsize, itemsize) > fit_budget:
            tile = _round_down(tile // 2, _SUBLANE)
    return _split_for_two_cores(B, tile, _SUBLANE, multi_core)


# ------------------------------ kernels -----------------------------------

def _bn_full_kernel(x_ref, gamma_ref, beta_ref, o_ref, mean_ref, var_ref):
    # x_ref: (B, tile_n); the batch-axis reduction is fully contained in the block.
    x = x_ref[...].astype(jnp.float32)
    g = gamma_ref[...].astype(jnp.float32)
    b = beta_ref[...].astype(jnp.float32)
    mean = jnp.mean(x, axis=0, keepdims=True)               # (1, tile_n)
    diff = x - mean
    var = jnp.mean(diff * diff, axis=0, keepdims=True)      # biased variance
    inv = lax.rsqrt(var + EPS)                               # EUP, off the VALU slots
    scale = inv * g                                          # fold affine: 2 ops/elem
    shift = b - mean * scale
    o_ref[...] = (x * scale + shift).astype(o_ref.dtype)
    mean_ref[...] = mean                                     # cheap extra outputs for
    var_ref[...] = var                                       # running-stats updates


def _make_bn_stats_kernel(B, tile_b):
    """Two-pass fallback, pass 1: per-feature sum / sum-of-squares accumulation
    over batch chunks (grid axis 1, 'arbitrary'); outputs stay VMEM-resident."""
    ragged = (B % tile_b) != 0

    def kernel(x_ref, sum_ref, sumsq_ref):
        k = pl.program_id(1)

        @pl.when(k == 0)
        def _():
            sum_ref[...] = jnp.zeros_like(sum_ref)
            sumsq_ref[...] = jnp.zeros_like(sumsq_ref)

        x = x_ref[...].astype(jnp.float32)
        if ragged:
            row = lax.broadcasted_iota(jnp.int32, x.shape, 0) + k * tile_b
            x = jnp.where(row < B, x, 0.0)                   # mask padded tail rows
        sum_ref[...] += jnp.sum(x, axis=0, keepdims=True)
        sumsq_ref[...] += jnp.sum(x * x, axis=0, keepdims=True)

    return kernel


def _bn_apply_kernel(x_ref, mean_ref, var_ref, gamma_ref, beta_ref, o_ref):
    # Two-pass fallback, pass 2: normalize with precomputed per-feature stats.
    x = x_ref[...].astype(jnp.float32)
    g = gamma_ref[...].astype(jnp.float32)
    b = beta_ref[...].astype(jnp.float32)
    inv = lax.rsqrt(var_ref[...] + EPS)
    scale = inv * g
    shift = b - mean_ref[...] * scale
    o_ref[...] = (x * scale + shift).astype(o_ref.dtype)


def _layernorm_kernel(x_ref, o_ref):
    # x_ref: (tile_b, N); per-row stats over the last axis, no affine.
    x = x_ref[...].astype(jnp.float32)
    mean = jnp.mean(x, axis=-1, keepdims=True)
    diff = x - mean
    var = jnp.mean(diff * diff, axis=-1, keepdims=True)
    o_ref[...] = (diff * lax.rsqrt(var + EPS)).astype(o_ref.dtype)


def _make_ln_folded_kernel(n):
    """Lane-dense LayerNorm for small n: each block row holds 128/n logical rows;
    per-group stats via a block-diagonal MXU matmul (segmented reduce)."""
    inv_n = 1.0 / float(n)

    def kernel(x_ref, o_ref):
        x = x_ref[...].astype(jnp.float32)                   # (tile_b, 128)
        L = x.shape[-1]
        ii = lax.broadcasted_iota(jnp.int32, (L, L), 0)
        jj = lax.broadcasted_iota(jnp.int32, (L, L), 1)
        seg = (ii // n == jj // n).astype(jnp.float32)        # block-diagonal ones
        mean = jnp.dot(x, seg, preferred_element_type=jnp.float32) * inv_n
        diff = x - mean
        var = jnp.dot(diff * diff, seg, preferred_element_type=jnp.float32) * inv_n
        o_ref[...] = (diff * lax.rsqrt(var + EPS)).astype(o_ref.dtype)

    return kernel


# ------------------------------ wrapper ------------------------------------

def bn1d_forward(x, gamma=None, beta=None, *, bn="full", return_stats=False,
                 two_pass=None, _tile_b=None, _tile_n=None):
    """Functional equivalent of BN1d.forward.

    For bn == 'full' with return_stats=True, returns (y, mean, var) so a training
    wrapper can update running stats without a second pass over x.
    """
    if x.shape[0] == 1:              # same static branch as the PyTorch module
        return x
    B, N = x.shape
    itemsize = x.dtype.itemsize
    vmem_limit, fit_budget, multi_core = _chip_config()

    if bn == "full":
        g = jnp.reshape(gamma, (1, N))
        b = jnp.reshape(beta, (1, N))
        min_block_elems = B * min(N, _LANE)
        use_two_pass = (two_pass if two_pass is not None else
                        _working_bytes(min_block_elems, itemsize, itemsize) > fit_budget)

        if not use_two_pass:
            tile_n = _tile_n or _bn_tile_n(B, N, itemsize, fit_budget, multi_core)
            grid = (pl.cdiv(N, tile_n),)
            y, mean, var = pl.pallas_call(
                _bn_full_kernel,
                out_shape=(jax.ShapeDtypeStruct((B, N), x.dtype),
                           jax.ShapeDtypeStruct((1, N), jnp.float32),
                           jax.ShapeDtypeStruct((1, N), jnp.float32)),
                grid_spec=pl.GridSpec(
                    grid=grid,
                    in_specs=[pl.BlockSpec((B, tile_n), lambda j: (0, j)),
                              pl.BlockSpec((1, tile_n), lambda j: (0, j)),
                              pl.BlockSpec((1, tile_n), lambda j: (0, j))],
                    out_specs=[pl.BlockSpec((B, tile_n), lambda j: (0, j)),
                               pl.BlockSpec((1, tile_n), lambda j: (0, j)),
                               pl.BlockSpec((1, tile_n), lambda j: (0, j))]),
                compiler_params=_compiler_params(("parallel",), vmem_limit),
            )(x, g, b)
        else:
            # Two-pass fallback for huge B: pipelined sum/sumsq reduction, then normalize.
            tile_n = _tile_n or (N if N <= _LANE else _round_down(min(N, 512), _LANE))
            if _tile_b:
                tile_b = _tile_b
            else:
                tile_b = _round_down(
                    min(B, max(_TARGET_BLOCK_ELEMS // tile_n, _SUBLANE)), _SUBLANE)
                while (tile_b > _SUBLANE and
                       _working_bytes(tile_b * tile_n, itemsize, itemsize) > fit_budget):
                    tile_b = _round_down(tile_b // 2, _SUBLANE)
            nb = pl.cdiv(B, tile_b)
            nj = pl.cdiv(N, tile_n)

            s, ss = pl.pallas_call(
                _make_bn_stats_kernel(B, tile_b),
                out_shape=(jax.ShapeDtypeStruct((1, N), jnp.float32),
                           jax.ShapeDtypeStruct((1, N), jnp.float32)),
                grid_spec=pl.GridSpec(
                    grid=(nj, nb),                       # reduction axis last
                    in_specs=[pl.BlockSpec((tile_b, tile_n), lambda j, k: (k, j))],
                    out_specs=[pl.BlockSpec((1, tile_n), lambda j, k: (0, j)),
                               pl.BlockSpec((1, tile_n), lambda j, k: (0, j))]),
                compiler_params=_compiler_params(("parallel", "arbitrary"), vmem_limit),
            )(x)
            mean = s * (1.0 / B)
            var = jnp.maximum(ss * (1.0 / B) - mean * mean, 0.0)

            y = pl.pallas_call(
                _bn_apply_kernel,
                out_shape=jax.ShapeDtypeStruct((B, N), x.dtype),
                grid_spec=pl.GridSpec(
                    grid=(nb, nj),
                    in_specs=[pl.BlockSpec((tile_b, tile_n), lambda i, j: (i, j)),
                              pl.BlockSpec((1, tile_n), lambda i, j: (0, j)),
                              pl.BlockSpec((1, tile_n), lambda i, j: (0, j)),
                              pl.BlockSpec((1, tile_n), lambda i, j: (0, j)),
                              pl.BlockSpec((1, tile_n), lambda i, j: (0, j))],
                    out_specs=pl.BlockSpec((tile_b, tile_n), lambda i, j: (i, j))),
                compiler_params=_compiler_params(("parallel", "parallel"), vmem_limit),
            )(x, mean, var, g, b)

        if return_stats:
            return y, mean.reshape(N), var.reshape(N)
        return y

    # ---------------- LayerNorm path ----------------
    x_work, fold = x, 1
    if N < _LANE and _LANE % N == 0 and B % (_LANE // N) == 0:
        fold = _LANE // N                      # lane-dense repack: (B, N) -> (B/k, 128)
        x_work = x.reshape(B // fold, fold * N)
    Bw, Nw = x_work.shape

    tile_b = _tile_b or _ln_tile_b(Bw, Nw, itemsize, fit_budget, multi_core)
    # TODO(synk): extremely large N (an (8, N) f32 block exceeding the VMEM budget,
    # N around a million) would need a sum/sumsq accumulator pass along N.
    grid = (pl.cdiv(Bw, tile_b),)
    kernel = _make_ln_folded_kernel(N) if fold > 1 else _layernorm_kernel
    y = pl.pallas_call(
        kernel,
        out_shape=jax.ShapeDtypeStruct((Bw, Nw), x.dtype),
        grid_spec=pl.GridSpec(
            grid=grid,
            in_specs=[pl.BlockSpec((tile_b, Nw), lambda i: (i, 0))],
            out_specs=pl.BlockSpec((tile_b, Nw), lambda i: (i, 0))),
        compiler_params=_compiler_params(("parallel",), vmem_limit),
    )(x_work)
    return y.reshape(B, N) if fold > 1 else y


# -------------------- pure-JAX references for checking --------------------

def _ref_bn(x, gamma, beta):
    xf = x.astype(jnp.float32)
    mean = jnp.mean(xf, axis=0, keepdims=True)
    var = jnp.mean((xf - mean) ** 2, axis=0, keepdims=True)
    return ((xf - mean) / jnp.sqrt(var + EPS)) * gamma[None, :] + beta[None, :]


def _ref_ln(x):
    xf = x.astype(jnp.float32)
    mean = jnp.mean(xf, axis=-1, keepdims=True)
    var = jnp.mean((xf - mean) ** 2, axis=-1, keepdims=True)
    return (xf - mean) / jnp.sqrt(var + EPS)


if __name__ == "__main__":
    keys = jax.random.split(jax.random.PRNGKey(0), 10)

    # (1) BatchNorm1d path, small (batch, hidden) input; also check emitted stats.
    B, N = 8, 32
    x = jax.random.normal(keys[0], (B, N), dtype=jnp.float32)
    gamma = 1.0 + 0.1 * jax.random.normal(keys[1], (N,), dtype=jnp.float32)
    beta = 0.1 * jax.random.normal(keys[2], (N,), dtype=jnp.float32)
    y, m, v = bn1d_forward(x, gamma, beta, bn="full", return_stats=True)
    y = jax.block_until_ready(y)
    assert jnp.allclose(y, _ref_bn(x, gamma, beta), atol=1e-4, rtol=1e-4)
    assert jnp.allclose(m, jnp.mean(x, axis=0), atol=1e-5)
    assert jnp.allclose(v, jnp.var(x, axis=0), atol=1e-5)

    # (2) LayerNorm path, small N -> lane-dense folded kernel.
    y_ln = jax.block_until_ready(bn1d_forward(x, bn="layer"))
    assert jnp.allclose(y_ln, _ref_ln(x), atol=1e-4, rtol=1e-4)

    # (3) batch-size-1 pass-through.
    x1 = x[:1]
    y1 = jax.block_until_ready(bn1d_forward(x1, gamma, beta, bn="full"))
    assert jnp.array_equal(y1, x1)

    # (4) BatchNorm, larger feature dim (bytes-driven tiles / 2-TC split on v7x).
    B2, N2 = 16, 1024
    x2 = jax.random.normal(keys[3], (B2, N2), dtype=jnp.float32)
    g2 = 1.0 + 0.1 * jax.random.normal(keys[4], (N2,), dtype=jnp.float32)
    b2 = 0.1 * jax.random.normal(keys[5], (N2,), dtype=jnp.float32)
    y2 = jax.block_until_ready(bn1d_forward(x2, g2, b2, bn="full"))
    assert jnp.allclose(y2, _ref_bn(x2, g2, b2), atol=1e-4, rtol=1e-4)

    # (5) BatchNorm two-pass capacity fallback, forced at a small shape
    #     (exercises accumulation + ragged batch-chunk masking: 20 rows, chunks of 8).
    B3, N3 = 20, 384
    x3 = jax.random.normal(keys[6], (B3, N3), dtype=jnp.float32)
    g3 = 1.0 + 0.1 * jax.random.normal(keys[7], (N3,), dtype=jnp.float32)
    b3 = 0.1 * jax.random.normal(keys[8], (N3,), dtype=jnp.float32)
    y3 = jax.block_until_ready(
        bn1d_forward(x3, g3, b3, bn="full", two_pass=True, _tile_b=8, _tile_n=128))
    assert jnp.allclose(y3, _ref_bn(x3, g3, b3), atol=1e-4, rtol=1e-4)

    # (6) LayerNorm, N not foldable (plain per-row kernel).
    B4, N4 = 24, 200
    x4 = jax.random.normal(keys[9], (B4, N4), dtype=jnp.float32)
    y4 = jax.block_until_ready(bn1d_forward(x4, bn="layer"))
    assert jnp.allclose(y4, _ref_ln(x4), atol=1e-4, rtol=1e-4)

    print("KERNEL_OK")
</pallas_src>

<mosaic_0001>
module attributes {stable_mosaic.version = 11 : i64} {
  func.func @_bn_full_kernel(%arg0: i32, %arg1: memref<8x32xf32, #tpu.memory_space<vmem>>, %arg2: memref<1x32xf32, #tpu.memory_space<vmem>>, %arg3: memref<1x32xf32, #tpu.memory_space<vmem>>, %arg4: memref<8x32xf32, #tpu.memory_space<vmem>>, %arg5: memref<1x32xf32, #tpu.memory_space<vmem>>, %arg6: memref<1x32xf32, #tpu.memory_space<vmem>>) attributes {dimension_semantics = [#tpu.dimension_semantics<parallel>], iteration_bounds = array<i64: 1>, scalar_prefetch = 0 : i64, scratch_operands = 0 : i64, tpu.core_type = #tpu.core_type<tc>, window_params = [{transform_indices = @transform_0, window_bounds = array<i64: 8, 32>}, {transform_indices = @transform_1, window_bounds = array<i64: 1, 32>}, {transform_indices = @transform_2, window_bounds = array<i64: 1, 32>}, {transform_indices = @transform_3, window_bounds = array<i64: 8, 32>}, {transform_indices = @transform_4, window_bounds = array<i64: 1, 32>}, {transform_indices = @transform_5, window_bounds = array<i64: 1, 32>}]} {
    %c0 = arith.constant 0 : index
    %c0_0 = arith.constant 0 : index
    %0 = vector.load %arg1[%c0, %c0_0] : memref<8x32xf32, #tpu.memory_space<vmem>>, vector<8x32xf32>
    %c0_1 = arith.constant 0 : index
    %c0_2 = arith.constant 0 : index
    %1 = vector.load %arg2[%c0_1, %c0_2] : memref<1x32xf32, #tpu.memory_space<vmem>>, vector<1x32xf32>
    %c0_3 = arith.constant 0 : index
    %c0_4 = arith.constant 0 : index
    %2 = vector.load %arg3[%c0_3, %c0_4] : memref<1x32xf32, #tpu.memory_space<vmem>>, vector<1x32xf32>
    %cst = arith.constant dense<0.000000e+00> : vector<32xf32>
    %3 = vector.multi_reduction <add>, %0, %cst [0] : vector<8x32xf32> to vector<32xf32>
    %4 = vector.shape_cast %3 : vector<32xf32> to vector<1x32xf32>
    %cst_5 = arith.constant 8.000000e+00 : f32
    %5 = vector.broadcast %cst_5 : f32 to vector<1x32xf32>
    %6 = arith.divf %4, %5 : vector<1x32xf32>
    %7 = vector.broadcast %6 : vector<1x32xf32> to vector<8x32xf32>
    %8 = arith.subf %0, %7 : vector<8x32xf32>
    %9 = arith.mulf %8, %8 : vector<8x32xf32>
    %cst_6 = arith.constant dense<0.000000e+00> : vector<32xf32>
    %10 = vector.multi_reduction <add>, %9, %cst_6 [0] : vector<8x32xf32> to vector<32xf32>
    %11 = vector.shape_cast %10 : vector<32xf32> to vector<1x32xf32>
    %cst_7 = arith.constant 8.000000e+00 : f32
    %12 = vector.broadcast %cst_7 : f32 to vector<1x32xf32>
    %13 = arith.divf %11, %12 : vector<1x32xf32>
    %cst_8 = arith.constant 9.99999974E-6 : f32
    %14 = vector.broadcast %cst_8 : f32 to vector<1x32xf32>
    %15 = arith.addf %13, %14 : vector<1x32xf32>
    %16 = math.rsqrt %15 : vector<1x32xf32>
    %17 = arith.mulf %16, %1 : vector<1x32xf32>
    %18 = arith.mulf %6, %17 : vector<1x32xf32>
    %19 = arith.subf %2, %18 : vector<1x32xf32>
    %20 = vector.broadcast %17 : vector<1x32xf32> to vector<8x32xf32>
    %21 = arith.mulf %0, %20 : vector<8x32xf32>
    %22 = vector.broadcast %19 : vector<1x32xf32> to vector<8x32xf32>
    %23 = arith.addf %21, %22 : vector<8x32xf32>
    %c0_9 = arith.constant 0 : index
    %c0_10 = arith.constant 0 : index
    %24 = vector.load %arg4[%c0_9, %c0_10] : memref<8x32xf32, #tpu.memory_space<vmem>>, vector<8x32xf32>
    tpu.vector_store %arg4[%c0_9, %c0_10], %23 {strides = array<i32>} : memref<8x32xf32, #tpu.memory_space<vmem>>, vector<8x32xf32>,
    %c0_11 = arith.constant 0 : index
    %c0_12 = arith.constant 0 : index
    %25 = vector.load %arg5[%c0_11, %c0_12] : memref<1x32xf32, #tpu.memory_space<vmem>>, vector<1x32xf32>
    tpu.vector_store %arg5[%c0_11, %c0_12], %6 {strides = array<i32>} : memref<1x32xf32, #tpu.memory_space<vmem>>, vector<1x32xf32>,
    %c0_13 = arith.constant 0 : index
    %c0_14 = arith.constant 0 : index
    %26 = vector.load %arg6[%c0_13, %c0_14] : memref<1x32xf32, #tpu.memory_space<vmem>>, vector<1x32xf32>
    tpu.vector_store %arg6[%c0_13, %c0_14], %13 {strides = array<i32>} : memref<1x32xf32, #tpu.memory_space<vmem>>, vector<1x32xf32>,
    return
  }
  func.func @transform_0(%arg0: i32) -> (i32, i32) {
    %c0_i32 = arith.constant 0 : i32
    %c0_i32_0 = arith.constant 0 : i32
    return %c0_i32, %arg0 : i32, i32
  }
  func.func @transform_1(%arg0: i32) -> (i32, i32) {
    %c0_i32 = arith.constant 0 : i32
    %c0_i32_0 = arith.constant 0 : i32
    return %c0_i32, %arg0 : i32, i32
  }
  func.func @transform_2(%arg0: i32) -> (i32, i32) {
    %c0_i32 = arith.constant 0 : i32
    %c0_i32_0 = arith.constant 0 : i32
    return %c0_i32, %arg0 : i32, i32
  }
  func.func @transform_3(%arg0: i32) -> (i32, i32) {
    %c0_i32 = arith.constant 0 : i32
    %c0_i32_0 = arith.constant 0 : i32
    return %c0_i32, %arg0 : i32, i32
  }
  func.func @transform_4(%arg0: i32) -> (i32, i32) {
    %c0_i32 = arith.constant 0 : i32
    %c0_i32_0 = arith.constant 0 : i32
    return %c0_i32, %arg0 : i32, i32
  }
  func.func @transform_5(%arg0: i32) -> (i32, i32) {
    %c0_i32 = arith.constant 0 : i32
    %c0_i32_0 = arith.constant 0 : i32
    return %c0_i32, %arg0 : i32, i32
  }
}

</mosaic_0001>

<bundles_post_ra>
// kernel: tpu_custom_call.1
= control target key start
LH: loop header
LB: loop body
LE: loop exit
PB: predicated region body
PF: predicated region fallthrough
CT: control target
= control target key end

     0   :  { %11 = vsyncpa [#allocation3], 0  ;;  %s315_s0 = inlined_call_operand.hbm [shape: f32[8,32], index: 0, kind: input, shape index: {}]   ;;  %s316_s1 = inlined_call_operand.vmem [shape: f32[1,32], index: 1, kind: input, shape index: {}]   ;;  %s317_s2 = inlined_call_operand.vmem [shape: f32[1,32], index: 2, kind: input, shape index: {}]   ;;  %s318_s3 = inlined_call_operand.hbm [shape: f32[8,32], index: 3, kind: output, shape index: {0}]   ;;  %s319_s4 = inlined_call_operand.hbm [shape: f32[1,32], index: 4, kind: output, shape index: {1}]   ;;  %s320_s5 = inlined_call_operand.hbm [shape: f32[1,32], index: 5, kind: output, shape index: {2}]  }
   0x1   :  { %12 = vsyncpa [#allocation4], 0 }
   0x2   :  { %13 = vsyncpa [#allocation7], 0  ;;  %s217_s18 = smov [#allocation2]   ;;  %s123_s22 = scalar_lea.hbm %s315_s0, 128 }
   0x3   :  { %s20_s19 = sshll.u32 %s217_s18, 4  ;;  %p124_p0 = scmp.ne.s32.totalorder %s315_s0, %s123_s22  ;;  %s21_s19 = int_to_ptr.vmem [resolvable:$true] %s20_s19 }
   0x4   :  { %p127_p1 = scmp.lt.u32.totalorder %s123_s22, %s315_s0 }
   0x6   :  { %p129_p2 = pnand %p127_p1, %p124_p0 }
   0x8   :  { %132 = shalt.err (!%p129_p2)
}
   0x9   :  { %s133_s27 = scalar_lea.vmem %s21_s19, 128  ;;  %p138_p4 = scmp.lt.s32.totalorder %s21_s19, %s21_s19 }
   0xa   :  { %p134_p3 = scmp.ne.s32.totalorder %s21_s19, %s133_s27  ;;  %p139_p5 = scmp.lt.s32.totalorder %s133_s27, %s133_s27 }
   0xc   :  { %p140_p6 = por %p139_p5, %p138_p4 }
   0xe   :  { %p141_p7 = pnand %p140_p6, %p134_p3 }
  0x10   :  { %144 = shalt.err (!%p141_p7)
}
  0x11   :  { %23 = dma.hbm_to_vmem [thread:$0]  %s315_s0, 128, %s21_s19, [#allocation3]  }
  0x12   :  { %211 = dma.done.wait [#allocation3], 128  }
  0x13   :  { %212 = vsyncadd [#allocation3], 4294967168  ;;  %vm34_vm0 = vcmask 261120   ;;  %v263_v0 = vld [vmem:[#allocation2] sm:$0xff]  ;;  %s218_s30 = smov [#allocation6]   ;;  %vm72_vm1 = vcmask 253952  }
  0x14   :  { %v35_v1 = vsel %vm34_vm0, %v263_v0, 0.0  ;;  %s91_s6 = sshll.u32 %s218_s30, 4  ;;  %s92_s6 = int_to_ptr.vmem [resolvable:$true] %s91_s6 }
  0x15   :  { %v36_v2 = vrot.slane %v35_v1, 4  ;;  %s145_s0 = scalar_lea.vmem %s92_s6, 16  ;;  %s149_s7 = scalar_lea.vmem %s92_s6, 32 }
  0x16   :  { %p146_p8 = scmp.ne.s32.totalorder %s92_s6, %s145_s0  ;;  %p150_p9 = scmp.lt.s32.totalorder %s92_s6, %s92_s6 }
  0x17   :  { %v37_v3 = vadd.f32 %v36_v2, %v35_v1  ;;  %p151_p10 = scmp.lt.s32.totalorder %s149_s7, %s145_s0 }
  0x19   :  { %v38_v4 = vrot.slane %v37_v3, 2  ;;  %p152_p11 = por %p151_p10, %p150_p9 }
  0x1b   :  { %v39_v5 = vadd.f32 %v38_v4, %v37_v3  ;;  %p153_p12 = pnand %p152_p11, %p146_p8 }
  0x1d   :  { %v40_v6 = vrot.slane %v39_v5, 1 }
  0x1f   :  { %v41_v7 = vadd.f32 %v40_v6, %v39_v5 }
  0x21   :  { %v43_v8 = vmul.f32 0.125, %v41_v7 }
  0x23   :  { %v44_v9 = vsub.f32 %v263_v0, %v43_v8  ;;  %73 = vst.msk [vmem:[#allocation6] sm:$0x1] %vm72_vm1, %v43_v8 }
  0x24   :  { %156 = shalt.err (!%p153_p12)
}
  0x25   :  { %s157_s10 = scalar_lea.hbm %s319_s4, 16 }
  0x26   :  { %p158_p13 = scmp.ne.s32.totalorder %s319_s4, %s157_s10  ;;  %p161_p0 = scmp.lt.u32.totalorder %s157_s10, %s319_s4 }
  0x28   :  { %p163_p1 = pnand %p161_p0, %p158_p13 }
  0x2a   :  { %166 = shalt.err (!%p163_p1)
}
  0x2b   :  { %94 = dma.vmem_to_hbm [thread:$0]  %s92_s6, 16, %s319_s4, [#allocation7]   ;;  %v45_v10 = vmul.f32 %v44_v9, %v44_v9 }
  0x2c   :  { %s219_s17 = smov [#allocation8]  }
  0x2d   :  { %v46_v11 = vsel %vm34_vm0, %v45_v10, 0.0  ;;  %s101_s18 = sshll.u32 %s219_s17, 4  ;;  %s102_s18 = int_to_ptr.vmem [resolvable:$true] %s101_s18 }
  0x2e   :  { %v47_v12 = vrot.slane %v46_v11, 4  ;;  %s167_s19 = scalar_lea.vmem %s102_s18, 16  ;;  %s171_s20 = scalar_lea.vmem %s102_s18, 32 }
  0x2f   :  { %p168_p2 = scmp.ne.s32.totalorder %s102_s18, %s167_s19  ;;  %p172_p3 = scmp.lt.s32.totalorder %s102_s18, %s102_s18 }
  0x30   :  { %v48_v13 = vadd.f32 %v47_v12, %v46_v11  ;;  %p173_p4 = scmp.lt.s32.totalorder %s171_s20, %s167_s19 }
  0x32   :  { %v49_v14 = vrot.slane %v48_v13, 2  ;;  %p174_p5 = por %p173_p4, %p172_p3 }
  0x34   :  { %v50_v15 = vadd.f32 %v49_v14, %v48_v13  ;;  %p175_p6 = pnand %p174_p5, %p168_p2 }
  0x36   :  { %v51_v16 = vrot.slane %v50_v15, 1 }
  0x38   :  { %v52_v17 = vadd.f32 %v51_v16, %v50_v15 }
  0x3a   :  { %v53_v18 = vmul.f32 0.125, %v52_v17 }
  0x3c   :  { %v54_v19 = vadd.f32 1e-05, %v53_v18  ;;  %74 = vst.msk [vmem:[#allocation8] sm:$0x1] %vm72_vm1, %v53_v18 }
  0x3d   :  { %178 = shalt.err (!%p175_p6)
}
  0x3e   :  { %s179_s22 = scalar_lea.hbm %s320_s5, 16 }
  0x3f   :  { %p180_p7 = scmp.ne.s32.totalorder %s320_s5, %s179_s22  ;;  %p183_p8 = scmp.lt.u32.totalorder %s179_s22, %s320_s5 }
  0x41   :  { %p185_p9 = pnand %p183_p8, %p180_p7 }
  0x43   :  { %188 = shalt.err (!%p185_p9)
}
  0x44   :  { %104 = dma.vmem_to_hbm [thread:$0]  %s102_s18, 16, %s320_s5, [#allocation7]   ;;  %121 = vrsqrt.f32 %v54_v19  ;;  %v59_v20 = vlaneseq  ;;  %v32_v22 = vld [vmem:[%s316_s1] sm:$0x1] }
  0x45   :  { %v33_v26 = vld [vmem:[%s317_s2] sm:$0x1]  ;;  %s220_s5 = smov [#allocation5]  }
  0x46   :  { %v60_v21 = vshrl.u32 %v59_v20, 7  ;;  %s81_s7 = sshll.u32 %s220_s5, 4  ;;  %s82_s7 = int_to_ptr.vmem [resolvable:$true] %s81_s7 }
  0x47   :  { %s189_s1 = scalar_lea.vmem %s82_s7, 128  ;;  %p194_p11 = scmp.lt.s32.totalorder %s82_s7, %s82_s7 }
  0x48   :  { %v61_v23 = vsub.s32 0, %v60_v21  ;;  %p190_p10 = scmp.ne.s32.totalorder %s82_s7, %s189_s1  ;;  %p195_p12 = scmp.lt.s32.totalorder %s189_s1, %s189_s1 }
  0x4a   :  { %p196_p13 = por %p195_p12, %p194_p11 }
  0x4c   :  { %p197_p0 = pnand %p196_p13, %p190_p10 }
  0x4e   :  { %v122_v24 = vpop.eup %121 }
  0x4f   :  { %v56_v25 = vmul.f32 %v122_v24, %v32_v22 }
  0x51   :  { %v57_v27 = vmul.f32 %v56_v25, %v43_v8  ;;  %v62_v28 = vrot.slane %v56_v25, %v61_v23 }
  0x53   :  { %v58_v29 = vsub.f32 %v33_v26, %v57_v27  ;;  %v63_v30 = vmul.f32 %v62_v28, %v263_v0 }
  0x55   :  { %v68_v31 = vrot.slane %v58_v29, %v61_v23 }
  0x57   :  { %v70_v32 = vadd.f32 %v68_v31, %v63_v30 }
  0x59   :  { %71 = vst.msk [vmem:[#allocation5] sm:$0xff] %vm34_vm0, %v70_v32 }
  0x5a   :  { %200 = shalt.err (!%p197_p0)
}
  0x5b   :  { %s201_s9 = scalar_lea.hbm %s318_s3, 128 }
  0x5c   :  { %p202_p1 = scmp.ne.s32.totalorder %s318_s3, %s201_s9  ;;  %p205_p2 = scmp.lt.u32.totalorder %s201_s9, %s318_s3 }
  0x5e   :  { %p207_p3 = pnand %p205_p2, %p202_p1 }
  0x60   :  { %210 = shalt.err (!%p207_p3)
}
  0x61   :  { %84 = dma.vmem_to_hbm [thread:$0]  %s82_s7, 128, %s318_s3, [#allocation4]  }
  0x62   :  { %213 = dma.done.wait [#allocation4], 128  }
  0x63   :  { %214 = vsyncadd [#allocation4], 4294967168 }
  0x64   :  { %215 = dma.done.wait [#allocation7], 32  }
  0x65   :  { %216 = vsyncadd [#allocation7], 4294967264 }
  0x66   :  { %114 = vsyncpa [#allocation3], 1 }
  0x67   :  { %115 = vsyncpa [#allocation4], 1 }
  0x68   :  { %116 = vsyncpa [#allocation7], 1 }

</bundles_post_ra>
